<compile_context>
chip_gen: v7x
topology: tpu7x:2x2x1
jax: 0.10.0
libtpu: 0.0.40
codegen_flags: <defaults>
</compile_context>

<pallas_src>
import functools
import math

import jax
import jax.numpy as jnp
from jax.experimental import pallas as pl
from jax.experimental.pallas import tpu as pltpu


# ----------------------------------------------------------------------------
# Tiling helpers
# ----------------------------------------------------------------------------

def _row_tile(n, target):
    """Largest row tile: whole array if it fits the target, else an 8-multiple."""
    if n <= target:
        return n
    return max(8, (target // 8) * 8)


def _head_group(heads, sq, sk, dh, budget_bytes=4 << 20):
    """How many heads to process per attention grid step (divides H, tiling-legal)."""
    per_head = 4 * (2 * sq * dh + 2 * sk * dh + sq * sk)   # rough f32 bytes/head
    cands = sorted(d for d in range(1, heads + 1)
                   if heads % d == 0 and (d == heads or d % 8 == 0))
    for g in reversed(cands):
        if g * per_head <= budget_bytes:
            return g
    return cands[0]


# ----------------------------------------------------------------------------
# Kernels
# ----------------------------------------------------------------------------

def _ln_kernel(*refs, has_residual):
    """LayerNorm over the last dim, optionally fused with a residual add."""
    if has_residual:
        x_ref, r_ref, g_ref, b_ref, o_ref = refs
        x = x_ref[...].astype(jnp.float32) + r_ref[...].astype(jnp.float32)
    else:
        x_ref, g_ref, b_ref, o_ref = refs
        x = x_ref[...].astype(jnp.float32)
    mu = jnp.mean(x, axis=-1, keepdims=True)
    var = jnp.mean((x - mu) ** 2, axis=-1, keepdims=True)
    inv = jax.lax.rsqrt(var + 1e-5)
    y = (x - mu) * inv * g_ref[...].astype(jnp.float32) + b_ref[...].astype(jnp.float32)
    o_ref[...] = y.astype(o_ref.dtype)


def layernorm2d(x2d, gamma, beta, residual=None):
    N, D = x2d.shape
    tm = _row_tile(N, 1024)
    row = pl.BlockSpec((tm, D), lambda i: (i, 0))
    vec = pl.BlockSpec((1, D), lambda i: (0, 0))
    has_res = residual is not None
    operands = [x2d] + ([residual] if has_res else []) + [gamma.reshape(1, D),
                                                          beta.reshape(1, D)]
    in_specs = [row] + ([row] if has_res else []) + [vec, vec]
    return pl.pallas_call(
        functools.partial(_ln_kernel, has_residual=has_res),
        out_shape=jax.ShapeDtypeStruct((N, D), x2d.dtype),
        grid=(pl.cdiv(N, tm),),
        in_specs=in_specs,
        out_specs=row,
        compiler_params=pltpu.CompilerParams(dimension_semantics=("parallel",)),
    )(*operands)


def layernorm3d(x, gamma, beta, residual=None):
    S, B, D = x.shape
    r2 = None if residual is None else residual.reshape(S * B, D)
    return layernorm2d(x.reshape(S * B, D), gamma, beta, r2).reshape(S, B, D)


def _linear_kernel(x_ref, w_ref, b_ref, o_ref, *, relu):
    x = x_ref[...].astype(jnp.float32)
    w = w_ref[...].astype(jnp.float32)
    y = jnp.dot(x, w, preferred_element_type=jnp.float32) + b_ref[...].astype(jnp.float32)
    if relu:
        y = jnp.maximum(y, 0.0)
    o_ref[...] = y.astype(o_ref.dtype)


def linear(x2d, w, b, relu=False, tm_target=256):
    # TODO(synk): for the real vae_conf (D=4096, 3D-wide fused QKV weights) add a
    # K-reduction grid axis with an f32 VMEM accumulator + vmem_limit_bytes so the
    # working set stays within v7x's 64 MiB VMEM; the full-weight block is fine at
    # the demo sizes.
    N, Din = x2d.shape
    Dout = w.shape[1]
    tm = _row_tile(N, tm_target)
    return pl.pallas_call(
        functools.partial(_linear_kernel, relu=relu),
        out_shape=jax.ShapeDtypeStruct((N, Dout), x2d.dtype),
        grid=(pl.cdiv(N, tm),),
        in_specs=[
            pl.BlockSpec((tm, Din), lambda i: (i, 0)),
            pl.BlockSpec((Din, Dout), lambda i: (0, 0)),
            pl.BlockSpec((1, Dout), lambda i: (0, 0)),
        ],
        out_specs=pl.BlockSpec((tm, Dout), lambda i: (i, 0)),
        compiler_params=pltpu.CompilerParams(dimension_semantics=("parallel",)),
    )(x2d, w, b.reshape(1, Dout))


def _attn_kernel(q_ref, k_ref, v_ref, o_ref, *, scale, heads):
    """Scaled-dot-product attention for one (batch, head-group) block.

    q_ref/k_ref/v_ref: (S, 1, 1, G, Dh); o_ref: (Sq, 1, G, Dh).
    Per head: plain 2-D MXU dots + f32 softmax with EUP reciprocal.
    """
    for g in range(heads):
        q = q_ref[:, 0, 0, g, :].astype(jnp.float32)   # (Sq, Dh)
        k = k_ref[:, 0, 0, g, :].astype(jnp.float32)   # (Sk, Dh)
        v = v_ref[:, 0, 0, g, :].astype(jnp.float32)   # (Sk, Dh)
        s = jax.lax.dot_general(q, k, (((1,), (1,)), ((), ())),
                                preferred_element_type=jnp.float32) * scale
        m = jnp.max(s, axis=-1, keepdims=True)
        p = jnp.exp(s - m)
        p = p * pl.reciprocal(jnp.sum(p, axis=-1, keepdims=True), approx=True)
        o = jnp.dot(p, v, preferred_element_type=jnp.float32)
        o_ref[:, 0, g, :] = o.astype(o_ref.dtype)


def sdpa_packed(q_pack, kv_pack, *, q_idx, k_idx, v_idx):
    """Attention over packed projections.

    q_pack:  (Sq, B, Pq, H, Dh)  — query taken at index q_idx along dim 2.
    kv_pack: (Sk, B, Pk, H, Dh)  — key/value at indices k_idx / v_idx.
    Returns (Sq, B, H, Dh); head selection is done by index_map (no transposes).
    """
    Sq, B, _, H, Dh = q_pack.shape
    Sk = kv_pack.shape[0]
    G = _head_group(H, Sq, Sk, Dh)
    scale = 1.0 / math.sqrt(Dh)
    return pl.pallas_call(
        functools.partial(_attn_kernel, scale=scale, heads=G),
        out_shape=jax.ShapeDtypeStruct((Sq, B, H, Dh), q_pack.dtype),
        grid=(B, H // G),
        in_specs=[
            pl.BlockSpec((Sq, 1, 1, G, Dh), lambda b, g: (0, b, q_idx, g, 0)),
            pl.BlockSpec((Sk, 1, 1, G, Dh), lambda b, g: (0, b, k_idx, g, 0)),
            pl.BlockSpec((Sk, 1, 1, G, Dh), lambda b, g: (0, b, v_idx, g, 0)),
        ],
        out_specs=pl.BlockSpec((Sq, 1, G, Dh), lambda b, g: (0, b, g, 0)),
        compiler_params=pltpu.CompilerParams(
            dimension_semantics=("parallel", "parallel")),
    )(q_pack, kv_pack, kv_pack)


def _to_latent_kernel(x_ref, wm_ref, wl_ref, bm_ref, bl_ref, eps_ref,
                      mean_ref, logvar_ref, z_ref):
    """Fused to_latent linear + VAE reparameterization."""
    x = x_ref[...].astype(jnp.float32)
    mean = jnp.dot(x, wm_ref[...].astype(jnp.float32),
                   preferred_element_type=jnp.float32) + bm_ref[...].astype(jnp.float32)
    logvar = jnp.dot(x, wl_ref[...].astype(jnp.float32),
                     preferred_element_type=jnp.float32) + bl_ref[...].astype(jnp.float32)
    z = mean + eps_ref[...].astype(jnp.float32) * jnp.exp(0.5 * logvar)
    mean_ref[...] = mean.astype(mean_ref.dtype)
    logvar_ref[...] = logvar.astype(logvar_ref.dtype)
    z_ref[...] = z.astype(z_ref.dtype)


def to_latent_reparam(x2d, wm, wl, bm, bl, eps2d):
    N, Din = x2d.shape
    L = wm.shape[1]
    tm = _row_tile(N, 256)
    row_in = pl.BlockSpec((tm, Din), lambda i: (i, 0))
    row_L = pl.BlockSpec((tm, L), lambda i: (i, 0))
    w_spec = pl.BlockSpec((Din, L), lambda i: (0, 0))
    b_spec = pl.BlockSpec((1, L), lambda i: (0, 0))
    shp = jax.ShapeDtypeStruct((N, L), x2d.dtype)
    return pl.pallas_call(
        _to_latent_kernel,
        out_shape=(shp, shp, shp),
        grid=(pl.cdiv(N, tm),),
        in_specs=[row_in, w_spec, w_spec, b_spec, b_spec, row_L],
        out_specs=(row_L, row_L, row_L),
        compiler_params=pltpu.CompilerParams(dimension_semantics=("parallel",)),
    )(x2d, wm, wl, bm.reshape(1, L), bl.reshape(1, L), eps2d)


# ----------------------------------------------------------------------------
# Model glue: multi-head attention, transformer layers, VAE, FinalLayerNormV2.
# Dropout layers (p=0.1) are identity (inference semantics).
# ----------------------------------------------------------------------------
# TODO(synk): torch dropout (training mode) omitted and .half() kept as fp32;
# kernels implement eval-mode fp32 semantics.

def self_mha(x, p, H):
    S, B, D = x.shape
    Dh = D // H
    qkv = linear(x.reshape(S * B, D), p["Wqkv"], p["bqkv"])          # (S*B, 3D)
    qkv5 = qkv.reshape(S, B, 3, H, Dh)                               # pure reshape
    o = sdpa_packed(qkv5, qkv5, q_idx=0, k_idx=1, v_idx=2)           # (S, B, H, Dh)
    return linear(o.reshape(S * B, D), p["Wo"], p["bo"]).reshape(S, B, D)


def cross_mha(x, memory, p, H):
    Sq, B, D = x.shape
    Sk = memory.shape[0]
    Dh = D // H
    q = linear(x.reshape(Sq * B, D), p["Wq"], p["bq"]).reshape(Sq, B, 1, H, Dh)
    kv = linear(memory.reshape(Sk * B, D), p["Wkv"], p["bkv"]).reshape(Sk, B, 2, H, Dh)
    o = sdpa_packed(q, kv, q_idx=0, k_idx=0, v_idx=1)                # (Sq, B, H, Dh)
    return linear(o.reshape(Sq * B, D), p["Wo"], p["bo"]).reshape(Sq, B, D)


def ff_block(x, p):
    S, B, D = x.shape
    h = linear(x.reshape(S * B, D), p["W1"], p["b1"], relu=True)
    y = linear(h, p["W2"], p["b2"])
    return y.reshape(S, B, D)


def encoder_layer(x, p, H):
    # nn.TransformerEncoderLayer, norm_first=False (post-norm), relu activation
    x = layernorm3d(self_mha(x, p["self_attn"], H), p["ln1_g"], p["ln1_b"], residual=x)
    x = layernorm3d(ff_block(x, p), p["ln2_g"], p["ln2_b"], residual=x)
    return x


def decoder_layer(x, memory, p, H):
    # nn.TransformerDecoderLayer, norm_first=False (post-norm), relu activation
    x = layernorm3d(self_mha(x, p["self_attn"], H), p["ln1_g"], p["ln1_b"], residual=x)
    x = layernorm3d(cross_mha(x, memory, p["cross_attn"], H),
                    p["ln2_g"], p["ln2_b"], residual=x)
    x = layernorm3d(ff_block(x, p), p["ln3_g"], p["ln3_b"], residual=x)
    return x


def vae_forward(x, params, H, noise_key):
    # TransformerVAEV2.forward: (reconstructed, x, z, mean, log_var)
    S, B, D = x.shape
    enc = x
    for lp in params["enc_layers"]:
        enc = encoder_layer(enc, lp, H)
    L = params["to_latent_Wm"].shape[1]
    eps = jax.random.normal(noise_key, (S * B, L), x.dtype)
    mean, log_var, z = to_latent_reparam(
        enc.reshape(S * B, D),
        params["to_latent_Wm"], params["to_latent_Wl"],
        params["to_latent_bm"], params["to_latent_bl"], eps)
    z3 = z.reshape(S, B, L)
    dec = z3
    for lp in params["dec_layers"]:
        dec = decoder_layer(dec, z3, lp, H)
    rec = linear(dec.reshape(S * B, L), params["out_W"], params["out_b"]).reshape(S, B, D)
    return rec, x, z3, mean.reshape(S, B, L), log_var.reshape(S, B, L)


FEATURE_MAP = {}


def final_layernorm_v2(x, params, H, noise_key):
    """FinalLayerNormV2.forward: layernorm -> VAE -> return reconstruction."""
    global FEATURE_MAP
    x_ln = layernorm3d(x, params["final_ln_g"], params["final_ln_b"])
    rec, x_ori, _z, _mean, _logvar = vae_forward(x_ln, params["vae"], H, noise_key)
    if "rec" in FEATURE_MAP.keys():
        FEATURE_MAP = {}
    FEATURE_MAP["rec"] = rec
    FEATURE_MAP["ori"] = x_ori
    return rec


# ----------------------------------------------------------------------------
# Deterministic parameter init (synthetic; shapes follow the nn.Module defs).
# ----------------------------------------------------------------------------

def _lin_params(key, din, dout, scale=0.05):
    kw, kb = jax.random.split(key)
    return (jax.random.normal(kw, (din, dout), jnp.float32) * scale,
            jax.random.normal(kb, (dout,), jnp.float32) * scale)


def _mha_params(key, d):
    ks = jax.random.split(key, 4)
    Wq, bq = _lin_params(ks[0], d, d)
    Wk, bk = _lin_params(ks[1], d, d)
    Wv, bv = _lin_params(ks[2], d, d)
    Wo, bo = _lin_params(ks[3], d, d)
    return dict(
        Wq=Wq, bq=bq,
        Wqkv=jnp.concatenate([Wq, Wk, Wv], axis=1),
        bqkv=jnp.concatenate([bq, bk, bv], axis=0),
        Wkv=jnp.concatenate([Wk, Wv], axis=1),
        bkv=jnp.concatenate([bk, bv], axis=0),
        Wo=Wo, bo=bo)


def _enc_layer_params(key, d, hidden):
    ks = jax.random.split(key, 3)
    W1, b1 = _lin_params(ks[1], d, hidden)
    W2, b2 = _lin_params(ks[2], hidden, d)
    return dict(self_attn=_mha_params(ks[0], d),
                W1=W1, b1=b1, W2=W2, b2=b2,
                ln1_g=jnp.ones((d,), jnp.float32), ln1_b=jnp.zeros((d,), jnp.float32),
                ln2_g=jnp.ones((d,), jnp.float32), ln2_b=jnp.zeros((d,), jnp.float32))


def _dec_layer_params(key, d, hidden):
    ks = jax.random.split(key, 4)
    W1, b1 = _lin_params(ks[2], d, hidden)
    W2, b2 = _lin_params(ks[3], hidden, d)
    return dict(self_attn=_mha_params(ks[0], d),
                cross_attn=_mha_params(ks[1], d),
                W1=W1, b1=b1, W2=W2, b2=b2,
                ln1_g=jnp.ones((d,), jnp.float32), ln1_b=jnp.zeros((d,), jnp.float32),
                ln2_g=jnp.ones((d,), jnp.float32), ln2_b=jnp.zeros((d,), jnp.float32),
                ln3_g=jnp.ones((d,), jnp.float32), ln3_b=jnp.zeros((d,), jnp.float32))


def init_params(key, d, hidden, latent, n_layers):
    ks = jax.random.split(key, 2 * n_layers + 3)
    enc_layers = [_enc_layer_params(ks[i], d, hidden) for i in range(n_layers)]
    dec_layers = [_dec_layer_params(ks[n_layers + i], d, hidden) for i in range(n_layers)]
    to_latent_W, to_latent_b = _lin_params(ks[-3], d, 2 * latent)
    out_W, out_b = _lin_params(ks[-2], latent, d)
    return dict(
        final_ln_g=jnp.ones((d,), jnp.float32),
        final_ln_b=jnp.zeros((d,), jnp.float32),
        vae=dict(enc_layers=enc_layers, dec_layers=dec_layers,
                 to_latent_Wm=to_latent_W[:, :latent],
                 to_latent_Wl=to_latent_W[:, latent:],
                 to_latent_bm=to_latent_b[:latent],
                 to_latent_bl=to_latent_b[latent:],
                 out_W=out_W, out_b=out_b),
    )


if __name__ == "__main__":
    # Small config analogous to vae_conf (input_dim == latent_dim, hidden < input):
    S, B = 8, 2
    D, HIDDEN, LATENT, N_LAYERS, HEADS = 32, 16, 32, 2, 4

    root = jax.random.PRNGKey(0)
    k_params, k_x, k_noise = jax.random.split(root, 3)
    params = init_params(k_params, D, HIDDEN, LATENT, N_LAYERS)
    x = jax.random.normal(k_x, (S, B, D), jnp.float32)   # (seq, batch, d_model)

    out = final_layernorm_v2(x, params, HEADS, k_noise)
    out = jax.block_until_ready(out)
    assert out.shape == (S, B, D) and bool(jnp.all(jnp.isfinite(out)))
    print("KERNEL_OK")
</pallas_src>

<mosaic_0001>
module attributes {stable_mosaic.version = 11 : i64} {
  func.func @_ln_kernel(%arg0: i32, %arg1: memref<16x32xf32, #tpu.memory_space<vmem>>, %arg2: memref<1x32xf32, #tpu.memory_space<vmem>>, %arg3: memref<1x32xf32, #tpu.memory_space<vmem>>, %arg4: memref<16x32xf32, #tpu.memory_space<vmem>>) attributes {dimension_semantics = [#tpu.dimension_semantics<parallel>], iteration_bounds = array<i64: 1>, scalar_prefetch = 0 : i64, scratch_operands = 0 : i64, tpu.core_type = #tpu.core_type<tc>, window_params = [{transform_indices = @transform_0, window_bounds = array<i64: 16, 32>}, {pipeline_mode = #tpu.pipeline_mode<synchronous>, transform_indices = @transform_1, window_bounds = array<i64: 1, 32>}, {pipeline_mode = #tpu.pipeline_mode<synchronous>, transform_indices = @transform_2, window_bounds = array<i64: 1, 32>}, {transform_indices = @transform_3, window_bounds = array<i64: 16, 32>}]} {
    %c0 = arith.constant 0 : index
    %c0_0 = arith.constant 0 : index
    %0 = vector.load %arg1[%c0, %c0_0] : memref<16x32xf32, #tpu.memory_space<vmem>>, vector<16x32xf32>
    %cst = arith.constant dense<0.000000e+00> : vector<16xf32>
    %1 = vector.multi_reduction <add>, %0, %cst [1] : vector<16x32xf32> to vector<16xf32>
    %2 = vector.shape_cast %1 : vector<16xf32> to vector<16x1xf32>
    %cst_1 = arith.constant 3.200000e+01 : f32
    %3 = vector.broadcast %cst_1 : f32 to vector<16x1xf32>
    %4 = arith.divf %2, %3 : vector<16x1xf32>
    %5 = vector.broadcast %4 : vector<16x1xf32> to vector<16x32xf32>
    %6 = arith.subf %0, %5 : vector<16x32xf32>
    %7 = arith.mulf %6, %6 : vector<16x32xf32>
    %cst_2 = arith.constant dense<0.000000e+00> : vector<16xf32>
    %8 = vector.multi_reduction <add>, %7, %cst_2 [1] : vector<16x32xf32> to vector<16xf32>
    %9 = vector.shape_cast %8 : vector<16xf32> to vector<16x1xf32>
    %cst_3 = arith.constant 3.200000e+01 : f32
    %10 = vector.broadcast %cst_3 : f32 to vector<16x1xf32>
    %11 = arith.divf %9, %10 : vector<16x1xf32>
    %cst_4 = arith.constant 9.99999974E-6 : f32
    %12 = vector.broadcast %cst_4 : f32 to vector<16x1xf32>
    %13 = arith.addf %11, %12 : vector<16x1xf32>
    %14 = math.rsqrt %13 : vector<16x1xf32>
    %15 = vector.broadcast %4 : vector<16x1xf32> to vector<16x32xf32>
    %16 = arith.subf %0, %15 : vector<16x32xf32>
    %17 = vector.broadcast %14 : vector<16x1xf32> to vector<16x32xf32>
    %18 = arith.mulf %16, %17 : vector<16x32xf32>
    %c0_5 = arith.constant 0 : index
    %c0_6 = arith.constant 0 : index
    %19 = vector.load %arg2[%c0_5, %c0_6] : memref<1x32xf32, #tpu.memory_space<vmem>>, vector<1x32xf32>
    %20 = vector.broadcast %19 : vector<1x32xf32> to vector<16x32xf32>
    %21 = arith.mulf %18, %20 : vector<16x32xf32>
    %c0_7 = arith.constant 0 : index
    %c0_8 = arith.constant 0 : index
    %22 = vector.load %arg3[%c0_7, %c0_8] : memref<1x32xf32, #tpu.memory_space<vmem>>, vector<1x32xf32>
    %23 = vector.broadcast %22 : vector<1x32xf32> to vector<16x32xf32>
    %24 = arith.addf %21, %23 : vector<16x32xf32>
    %c0_9 = arith.constant 0 : index
    %c0_10 = arith.constant 0 : index
    %25 = vector.load %arg4[%c0_9, %c0_10] : memref<16x32xf32, #tpu.memory_space<vmem>>, vector<16x32xf32>
    tpu.vector_store %arg4[%c0_9, %c0_10], %24 {strides = array<i32>} : memref<16x32xf32, #tpu.memory_space<vmem>>, vector<16x32xf32>,
    return
  }
  func.func @transform_0(%arg0: i32) -> (i32, i32) {
    %c0_i32 = arith.constant 0 : i32
    %c0_i32_0 = arith.constant 0 : i32
    return %arg0, %c0_i32 : i32, i32
  }
  func.func @transform_1(%arg0: i32) -> (i32, i32) {
    %c0_i32 = arith.constant 0 : i32
    %c0_i32_0 = arith.constant 0 : i32
    %c0_i32_1 = arith.constant 0 : i32
    return %c0_i32, %c0_i32_0 : i32, i32
  }
  func.func @transform_2(%arg0: i32) -> (i32, i32) {
    %c0_i32 = arith.constant 0 : i32
    %c0_i32_0 = arith.constant 0 : i32
    %c0_i32_1 = arith.constant 0 : i32
    return %c0_i32, %c0_i32_0 : i32, i32
  }
  func.func @transform_3(%arg0: i32) -> (i32, i32) {
    %c0_i32 = arith.constant 0 : i32
    %c0_i32_0 = arith.constant 0 : i32
    return %arg0, %c0_i32 : i32, i32
  }
}

</mosaic_0001>

<bundles_post_ra>
// kernel: tpu_custom_call.1
= control target key start
LH: loop header
LB: loop body
LE: loop exit
PB: predicated region body
PF: predicated region fallthrough
CT: control target
= control target key end

     0   :  { %8 = vsyncpa [#allocation3], 0  ;;  %s220_s0 = inlined_call_operand.hbm [shape: f32[16,32], index: 0, kind: input, shape index: {}]   ;;  %s221_s1 = inlined_call_operand.vmem [shape: f32[1,32], index: 1, kind: input, shape index: {}]   ;;  %s222_s2 = inlined_call_operand.vmem [shape: f32[1,32], index: 2, kind: input, shape index: {}]   ;;  %s223_s3 = inlined_call_operand.hbm [shape: f32[16,32], index: 3, kind: output, shape index: {}]  }
   0x1   :  { %9 = vsyncpa [#allocation4], 0  ;;  %s154_s12 = smov [#allocation2]   ;;  %s106_s16 = scalar_lea.hbm %s220_s0, 256 }
   0x2   :  { %s15_s13 = sshll.u32 %s154_s12, 4  ;;  %p107_p0 = scmp.ne.s32.totalorder %s220_s0, %s106_s16  ;;  %s16_s13 = int_to_ptr.vmem [resolvable:$true] %s15_s13 }
   0x3   :  { %p110_p1 = scmp.lt.u32.totalorder %s106_s16, %s220_s0 }
   0x5   :  { %p112_p2 = pnand %p110_p1, %p107_p0 }
   0x7   :  { %115 = shalt.err (!%p112_p2)
}
   0x8   :  { %s116_s21 = scalar_lea.vmem %s16_s13, 256  ;;  %p121_p4 = scmp.lt.s32.totalorder %s16_s13, %s16_s13 }
   0x9   :  { %p117_p3 = scmp.ne.s32.totalorder %s16_s13, %s116_s21  ;;  %p122_p5 = scmp.lt.s32.totalorder %s116_s21, %s116_s21 }
   0xb   :  { %p123_p6 = por %p122_p5, %p121_p4 }
   0xd   :  { %p124_p7 = pnand %p123_p6, %p117_p3 }
   0xf   :  { %127 = shalt.err (!%p124_p7)
}
  0x10   :  { %s155_s22 = smov 128   ;;  %s156_s23 = smov 8  }
  0x11   :  { %21 = dma.hbm_to_vmem [thread:$0]  %s220_s0, 256, %s16_s13, [#allocation3], %s155_s22, %s155_s22, %s156_s23  }
  0x12   :  { %150 = dma.done.wait [#allocation3], 256  }
  0x13   :  { %151 = vsyncadd [#allocation3], 4294967040  ;;  %vm31_vm0 = vcmask 261120   ;;  %v29_v0 = vld [vmem:[#allocation2] sm:$0xff]  ;;  %v30_v1 = vld [vmem:[#allocation2 + $0x8] sm:$0xff]  ;;  %s157_s29 = smov [#allocation5]  }
  0x14   :  { %v32_v2 = vsel %vm31_vm0, %v29_v0, 0.0  ;;  %v35_v3 = vsel %vm31_vm0, %v30_v1, 0.0  ;;  %v96_v21 = vld [vmem:[%s221_s1] ss:$0 sm:$0xff]  ;;  %s84_s30 = sshll.u32 %s157_s29, 4  ;;  %s85_s30 = int_to_ptr.vmem [resolvable:$true] %s84_s30 }
  0x15   :  { %33 = vadd.xlane.f32.xlu0 %v32_v2  ;;  %v97_v23 = vld [vmem:[%s222_s2] ss:$0 sm:$0xff]  ;;  %s128_s4 = scalar_lea.vmem %s85_s30, 256  ;;  %p133_p9 = scmp.lt.s32.totalorder %s85_s30, %s85_s30 }
  0x16   :  { %p129_p8 = scmp.ne.s32.totalorder %s85_s30, %s128_s4  ;;  %p134_p10 = scmp.lt.s32.totalorder %s128_s4, %s128_s4 }
  0x18   :  { %p135_p11 = por %p134_p10, %p133_p9 }
  0x19   :  { %36 = vadd.xlane.f32.xlu0 %v35_v3 }
  0x1a   :  { %p136_p12 = pnand %p135_p11, %p129_p8 }
  0xa2   :  { %v34_v4 = vpop.xlane.xlu0 %33 }
  0xa3   :  { %v39_v5 = vmul.f32 0.03125, %v34_v4 }
  0xa5   :  { %v41_v6 = vsub.f32 %v29_v0, %v39_v5 }
  0xa6   :  { %v37_v7 = vpop.xlane.xlu0 %36 }
  0xa7   :  { %v40_v8 = vmul.f32 0.03125, %v37_v7  ;;  %v43_v9 = vmul.f32 %v41_v6, %v41_v6 }
  0xa9   :  { %v42_v10 = vsub.f32 %v30_v1, %v40_v8  ;;  %v45_v11 = vsel %vm31_vm0, %v43_v9, 0.0 }
  0xaa   :  { %46 = vadd.xlane.f32.xlu1 %v45_v11 }
  0xab   :  { %v44_v12 = vmul.f32 %v42_v10, %v42_v10 }
  0xad   :  { %v48_v13 = vsel %vm31_vm0, %v44_v12, 0.0 }
  0xae   :  { %49 = vadd.xlane.f32.xlu1 %v48_v13 }
 0x137   :  { %v47_v14 = vpop.xlane.xlu1 %46 }
 0x138   :  { %v51_v15 = vmul.f32 0.03125, %v47_v14 }
 0x13a   :  { %v53_v16 = vadd.f32 1e-05, %v51_v15 }
 0x13b   :  { %v50_v17 = vpop.xlane.xlu1 %49 }
 0x13c   :  { %102 = vrsqrt.f32 %v53_v16  ;;  %v52_v18 = vmul.f32 0.03125, %v50_v17 }
 0x13e   :  { %v54_v19 = vadd.f32 1e-05, %v52_v18 }
 0x140   :  { %104 = vrsqrt.f32 %v54_v19 }
 0x146   :  { %v103_v20 = vpop.eup %102 }
 0x147   :  { %v57_v22 = vmul.f32 %v103_v20, %v41_v6 }
 0x149   :  { %v66_v24 = vmul.f32 %v96_v21, %v57_v22 }
 0x14a   :  { %v105_v25 = vpop.eup %104 }
 0x14b   :  { %v58_v26 = vmul.f32 %v105_v25, %v42_v10  ;;  %v75_v27 = vadd.f32 %v97_v23, %v66_v24 }
 0x14d   :  { %v67_v28 = vmul.f32 %v96_v21, %v58_v26  ;;  %77 = vst.msk [vmem:[#allocation5] sm:$0xff] %vm31_vm0, %v75_v27 }
 0x14f   :  { %v76_v29 = vadd.f32 %v97_v23, %v67_v28 }
 0x151   :  { %78 = vst.msk [vmem:[#allocation5 + $0x8] sm:$0xff] %vm31_vm0, %v76_v29 }
 0x152   :  { %139 = shalt.err (!%p136_p12)
}
 0x153   :  { %s140_s5 = scalar_lea.hbm %s223_s3, 256 }
 0x154   :  { %p141_p13 = scmp.ne.s32.totalorder %s223_s3, %s140_s5  ;;  %p144_p0 = scmp.lt.u32.totalorder %s140_s5, %s223_s3 }
 0x156   :  { %p146_p1 = pnand %p144_p0, %p141_p13 }
 0x158   :  { %149 = shalt.err (!%p146_p1)
}
 0x159   :  { %90 = dma.vmem_to_hbm [thread:$0]  %s85_s30, 256, %s223_s3, [#allocation4], %s155_s22, %s155_s22, %s156_s23  }
 0x15a   :  { %152 = dma.done.wait [#allocation4], 256  }
 0x15b   :  { %153 = vsyncadd [#allocation4], 4294967040 }
 0x15c   :  { %94 = vsyncpa [#allocation3], 1 }
 0x15d   :  { %95 = vsyncpa [#allocation4], 1 }

</bundles_post_ra>
